<compile_context>
chip_gen: v7x
topology: tpu7x:2x2x1
jax: 0.10.0
libtpu: 0.0.40
codegen_flags: <defaults>
</compile_context>

<pallas_src>
import functools

import jax
import jax.numpy as jnp
from jax.experimental import pallas as pl
from jax.experimental.pallas import tpu as pltpu


def _routing_kernel(inds_ref, x_ref, wt_ref, masks_ref, out_ref, acc_ref):
    """One (TB, TN) output tile of R(j, x) = T_j * (W x), K-tiled.

    inds_ref : [TB, 1]   int32   mask index per batch row
    x_ref    : [TB, TK]  f32     input rows (cast to matmul dtype in-kernel)
    wt_ref   : [TK, TN]  bf16    W transposed, one (K, N) panel
    masks_ref: [k, TN]   bf16    all binary masks, same column panel
    out_ref  : [TB, TN]  out dtype
    acc_ref  : [TB, TN]  f32     accumulator scratch (lives across K steps)
    """
    kk = pl.program_id(2)

    @pl.when(kk == 0)
    def _init():
        acc_ref[...] = jnp.zeros_like(acc_ref)

    # Cast x on the VMEM tile: HBM x stays f32, no wrapper-side cast op.
    x = x_ref[...].astype(wt_ref.dtype)
    acc_ref[...] += jnp.dot(x, wt_ref[...], preferred_element_type=jnp.float32)

    @pl.when(kk == pl.num_programs(2) - 1)
    def _finalize():
        num_masks = masks_ref.shape[0]
        inds = inds_ref[...]                                    # [TB, 1] int32
        if num_masks <= 16:
            # Small k: per-row mask via k VPU selects (free filler next to the
            # MXU) instead of spending a second full MXU pass on a one-hot.
            masks = masks_ref[...].astype(jnp.float32)          # [k, TN]
            mask = jnp.zeros(out_ref.shape, jnp.float32)
            for j in range(num_masks):
                mask = jnp.where(inds == j, masks[j][None, :], mask)
        else:
            # Large k: one-hot gather on the MXU (negligible vs. main matmul).
            iota_k = jax.lax.broadcasted_iota(jnp.int32, (1, num_masks), 1)
            onehot = (inds == iota_k).astype(masks_ref.dtype)   # [TB, k]
            mask = jnp.dot(onehot, masks_ref[...],
                           preferred_element_type=jnp.float32)
        # NOTE: an out-of-range index yields an all-zero mask row (silently
        # zeroed output) instead of erroring like torch indexing would.
        out_ref[...] = (acc_ref[...] * mask).astype(out_ref.dtype)


def _pick_block(dim, target, align):
    """Largest multiple of `align` <= `target` dividing `dim`, else full dim."""
    if dim <= target:
        return dim
    c = (target // align) * align
    while c >= align:
        if dim % c == 0:
            return c
        c -= align
    return dim


def _vmem_capacity_bytes():
    try:
        return int(pltpu.get_tpu_info().vmem_capacity_bytes)
    except Exception:  # conservative fallback if the query is unavailable
        return 64 * 1024 * 1024


def prepare_routing_params(w_t, output_masks, param_dtype=jnp.bfloat16):
    """One-time cast of static params to the MXU dtype (outside the hot path)."""
    return w_t.astype(param_dtype), output_masks.astype(param_dtype)


@functools.partial(
    jax.jit, static_argnames=("block_b", "block_n", "block_k", "out_dtype"))
def routing_forward(output_mask_inds, x, w_t, output_masks,
                    block_b=None, block_n=None, block_k=None,
                    out_dtype=jnp.bfloat16):
    """Pallas-backed RoutingFunction.forward.

    output_mask_inds: [B] int indices into output_masks
    x:                [B, d_in] float32 activations
    w_t:              [d_in, d_out] weight (transposed); pass the bf16 version
                      from prepare_routing_params to avoid per-call casts
    output_masks:     [k, d_out] binary masks (ideally bf16, same as above)
    out_dtype:        output dtype. bf16 default (the op is output-write bound
                      for small d_in); pass jnp.float32 for full-precision out.
    """
    b, d_in = x.shape
    d_in_w, d_out = w_t.shape
    k = output_masks.shape[0]
    assert d_in_w == d_in
    assert output_masks.shape[1] == d_out
    assert output_mask_inds.shape == (b,)

    vmem_cap = _vmem_capacity_bytes()
    n_target = 2048 if vmem_cap >= (96 << 20) else 1024  # v5e/v6e vs v7x

    auto_b, auto_n = block_b is None, block_n is None
    if block_b is None:
        block_b = _pick_block(b, 512, 16)          # 16-aligned: bf16 sublane pack
    if block_n is None:
        block_n = _pick_block(d_out, n_target, 128)
    if block_k is None:
        block_k = _pick_block(d_in, 2048, 128)

    # v7x megacore: make sure >=2 tiles exist along a parallel axis so both
    # TensorCores get work (costs one ~0.35us grid step on single-TC chips).
    if (auto_n or auto_b) and (b // block_b) * (d_out // block_n) == 1:
        if auto_n and block_n % 256 == 0:
            block_n //= 2
        elif auto_b and block_b % 32 == 0:
            block_b //= 2

    # No silent truncation: block sizes must tile the problem exactly.
    assert b % block_b == 0, (b, block_b)
    assert d_out % block_n == 0, (d_out, block_n)
    assert d_in % block_k == 0, (d_in, block_k)
    assert block_b % 8 == 0 or block_b == b
    assert block_n % 128 == 0 or block_n == d_out
    assert block_k % 128 == 0 or block_k == d_in

    nb, nn, nk = b // block_b, d_out // block_n, d_in // block_k

    inds = output_mask_inds.astype(jnp.int32).reshape(b, 1)

    w_bytes = jnp.dtype(w_t.dtype).itemsize
    m_bytes = jnp.dtype(output_masks.dtype).itemsize
    o_bytes = jnp.dtype(out_dtype).itemsize

    # VMEM budget from the actual tile footprint (double-buffered I/O + acc),
    # clamped below the chip's physical capacity.
    tile_bytes = (block_b * block_k * 4            # x tile (f32)
                  + block_k * block_n * w_bytes    # W.T panel
                  + k * block_n * m_bytes          # mask panel
                  + block_b * 4                    # indices
                  + block_b * block_n * o_bytes)   # output tile
    vmem_needed = 2 * tile_bytes + block_b * block_n * 4
    vmem_limit = int(1.5 * vmem_needed) + (4 << 20)
    vmem_limit = max(16 << 20, min(vmem_limit, vmem_cap - (4 << 20)))

    cost = pl.CostEstimate(
        flops=2 * b * d_in * d_out,
        transcendentals=0,
        bytes_accessed=(b * d_in * 4 + d_in * d_out * w_bytes
                        + k * d_out * m_bytes + b * 4 + b * d_out * o_bytes),
    )

    return pl.pallas_call(
        _routing_kernel,
        out_shape=jax.ShapeDtypeStruct((b, d_out), out_dtype),
        grid_spec=pltpu.PrefetchScalarGridSpec(
            num_scalar_prefetch=0,
            # d_out tiles outer, batch tiles middle, K reduction innermost
            # (accumulator convention); with nk == 1 the W.T / mask column
            # panels stay resident across batch tiles (no re-DMA).
            grid=(nn, nb, nk),
            in_specs=[
                pl.BlockSpec((block_b, 1), lambda j, i, kk: (i, 0)),         # inds
                pl.BlockSpec((block_b, block_k), lambda j, i, kk: (i, kk)),  # x
                pl.BlockSpec((block_k, block_n), lambda j, i, kk: (kk, j)),  # W.T
                pl.BlockSpec((k, block_n), lambda j, i, kk: (0, j)),         # masks
            ],
            out_specs=pl.BlockSpec((block_b, block_n), lambda j, i, kk: (i, j)),
            scratch_shapes=[pltpu.VMEM((block_b, block_n), jnp.float32)],
        ),
        compiler_params=pltpu.CompilerParams(
            # Output tiles along (nn, nb) are independent -> parallel (lets the
            # v7x megacore shard); the K axis is a reduction -> arbitrary.
            dimension_semantics=("parallel", "parallel", "arbitrary"),
            vmem_limit_bytes=vmem_limit,
        ),
        cost_estimate=cost,
    )(inds, x, w_t, output_masks)


def make_sparse_linear_weight(key, d_in, d_out, sparsity):
    """Stand-in for SparseWeights(nn.Linear(d_in, d_out, bias=False)).

    Per output unit, round(sparsity * d_in) input weights are zeroed; the
    remaining weights use a uniform Kaiming-style init like nn.Linear.
    """
    k_w, k_perm = jax.random.split(key)
    bound = 1.0 / jnp.sqrt(d_in)
    w = jax.random.uniform(
        k_w, (d_out, d_in), minval=-bound, maxval=bound, dtype=jnp.float32
    )
    num_zero = int(round(sparsity * d_in))
    if num_zero > 0:
        scores = jax.random.uniform(k_perm, (d_out, d_in))
        zero_idx = jnp.argsort(scores, axis=1)[:, :num_zero]     # [d_out, nz]
        row_idx = jnp.repeat(jnp.arange(d_out), num_zero)
        col_idx = zero_idx.reshape(-1)
        w = w.at[row_idx, col_idx].set(0.0)
    return w  # [d_out, d_in], like torch Linear.weight


def generate_random_binary_vectors(key, k, d_out):
    """k random binary vectors of length d_out (Bernoulli 0.5), float32."""
    return jax.random.bernoulli(key, 0.5, (k, d_out)).astype(jnp.float32)


if __name__ == "__main__":
    # Small shapes consistent with the module: d_in=32, d_out=256, k=4, B=16.
    d_in, d_out, k, batch = 32, 256, 4, 16
    sparsity = 0.7

    root = jax.random.PRNGKey(0)
    k_w, k_masks, k_x, k_inds = jax.random.split(root, 4)

    w = make_sparse_linear_weight(k_w, d_in, d_out, sparsity)    # [d_out, d_in]
    output_masks_f32 = generate_random_binary_vectors(k_masks, k, d_out)

    # One-time cast of static params (outside the per-call hot path).
    # TODO(synk): training-time SparseWeights re-masking is not modeled; only
    # the forward math of the already-masked weight is implemented here.
    w_t_bf, masks_bf = prepare_routing_params(jnp.transpose(w), output_masks_f32)

    x = jax.random.normal(k_x, (batch, d_in), dtype=jnp.float32)
    output_mask_inds = jax.random.randint(k_inds, (batch,), 0, k, dtype=jnp.int32)

    # Reference with the same bf16-operand / f32-accumulate math as the MXU.
    xb = x.astype(jnp.bfloat16).astype(jnp.float32)
    wtb = w_t_bf.astype(jnp.float32)
    ref = (xb @ wtb) * jnp.take(output_masks_f32, output_mask_inds, axis=0)

    # Default auto-tiled path (bf16 output; grid split to >=2 parallel tiles).
    out = routing_forward(output_mask_inds, x, w_t_bf, masks_bf)
    out = jax.block_until_ready(out)
    assert out.shape == (batch, d_out)
    assert out.dtype == jnp.bfloat16
    assert jnp.allclose(out.astype(jnp.float32), ref, atol=5e-2, rtol=5e-2), \
        "mismatch vs reference (bf16 out)"

    # Explicit tiles (grid (2, 2, 1)) with full-precision f32 output.
    out32 = routing_forward(output_mask_inds, x, w_t_bf, masks_bf,
                            block_b=8, block_n=128, out_dtype=jnp.float32)
    out32 = jax.block_until_ready(out32)
    assert out32.dtype == jnp.float32
    assert jnp.allclose(out32, ref, atol=1e-2, rtol=1e-2), \
        "tiled mismatch vs reference (f32 out)"

    print("KERNEL_OK")
</pallas_src>

<mosaic_0001>
module attributes {stable_mosaic.version = 11 : i64} {
  func.func @_routing_kernel(%arg0: i32, %arg1: i32, %arg2: i32, %arg3: memref<16x1xi32, #tpu.memory_space<vmem>>, %arg4: memref<16x32xf32, #tpu.memory_space<vmem>>, %arg5: memref<32x128xbf16, #tpu.memory_space<vmem>>, %arg6: memref<4x128xbf16, #tpu.memory_space<vmem>>, %arg7: memref<16x128xbf16, #tpu.memory_space<vmem>>, %arg8: memref<16x128xf32, #tpu.memory_space<vmem>>) attributes {dimension_semantics = [#tpu.dimension_semantics<parallel>, #tpu.dimension_semantics<parallel>, #tpu.dimension_semantics<arbitrary>], iteration_bounds = array<i64: 2, 1, 1>, scalar_prefetch = 0 : i64, scratch_operands = 1 : i64, tpu.core_type = #tpu.core_type<tc>, window_params = [{transform_indices = @transform_0, window_bounds = array<i64: 16, 1>}, {transform_indices = @transform_1, window_bounds = array<i64: 16, 32>}, {transform_indices = @transform_2, window_bounds = array<i64: 32, 128>}, {transform_indices = @transform_3, window_bounds = array<i64: 4, 128>}, {transform_indices = @transform_4, window_bounds = array<i64: 16, 128>}]} {
    %c0_i32 = arith.constant 0 : i32
    %0 = arith.cmpi eq, %arg2, %c0_i32 : i32
    %1 = arith.extui %0 : i1 to i32
    %c0_i32_0 = arith.constant 0 : i32
    %2 = arith.cmpi ne, %1, %c0_i32_0 : i32
    scf.if %2 {
      %cst_10 = arith.constant 0.000000e+00 : f32
      %13 = vector.broadcast %cst_10 : f32 to vector<16x128xf32>
      %c0_11 = arith.constant 0 : index
      %c0_12 = arith.constant 0 : index
      %14 = vector.load %arg8[%c0_11, %c0_12] : memref<16x128xf32, #tpu.memory_space<vmem>>, vector<16x128xf32>
      tpu.vector_store %arg8[%c0_11, %c0_12], %13 {strides = array<i32>} : memref<16x128xf32, #tpu.memory_space<vmem>>, vector<16x128xf32>,
    } else {
    }
    %c0 = arith.constant 0 : index
    %c0_1 = arith.constant 0 : index
    %3 = vector.load %arg4[%c0, %c0_1] : memref<16x32xf32, #tpu.memory_space<vmem>>, vector<16x32xf32>
    %4 = arith.truncf %3 : vector<16x32xf32> to vector<16x32xbf16>
    %c0_2 = arith.constant 0 : index
    %c0_3 = arith.constant 0 : index
    %5 = vector.load %arg8[%c0_2, %c0_3] : memref<16x128xf32, #tpu.memory_space<vmem>>, vector<16x128xf32>
    %c0_4 = arith.constant 0 : index
    %c0_5 = arith.constant 0 : index
    %6 = vector.load %arg5[%c0_4, %c0_5] : memref<32x128xbf16, #tpu.memory_space<vmem>>, vector<32x128xbf16>
    %cst = arith.constant dense<0.000000e+00> : vector<16x128xf32>
    %7 = tpu.matmul %4, %6, %cst {dimension_numbers = #tpu.dot_dimension_numbers<[1], [0], [0], [1], [0, 0, 1, 1], [], []>} : vector<16x32xbf16>, vector<32x128xbf16>, vector<16x128xf32> -> vector<16x128xf32>
    %8 = arith.addf %5, %7 : vector<16x128xf32>
    %c0_6 = arith.constant 0 : index
    %c0_7 = arith.constant 0 : index
    %9 = vector.load %arg8[%c0_6, %c0_7] : memref<16x128xf32, #tpu.memory_space<vmem>>, vector<16x128xf32>
    tpu.vector_store %arg8[%c0_6, %c0_7], %8 {strides = array<i32>} : memref<16x128xf32, #tpu.memory_space<vmem>>, vector<16x128xf32>,
    %c0_i32_8 = arith.constant 0 : i32
    %10 = arith.cmpi eq, %arg2, %c0_i32_8 : i32
    %11 = arith.extui %10 : i1 to i32
    %c0_i32_9 = arith.constant 0 : i32
    %12 = arith.cmpi ne, %11, %c0_i32_9 : i32
    scf.if %12 {
      %c0_10 = arith.constant 0 : index
      %c0_11 = arith.constant 0 : index
      %13 = vector.load %arg3[%c0_10, %c0_11] : memref<16x1xi32, #tpu.memory_space<vmem>>, vector<16x1xi32>
      %c0_12 = arith.constant 0 : index
      %c0_13 = arith.constant 0 : index
      %14 = vector.load %arg6[%c0_12, %c0_13] : memref<4x128xbf16, #tpu.memory_space<vmem>>, vector<4x128xbf16>
      %15 = arith.extf %14 : vector<4x128xbf16> to vector<4x128xf32>
      %cst_14 = arith.constant 0.000000e+00 : f32
      %16 = vector.broadcast %cst_14 : f32 to vector<16x128xf32>
      %c0_i32_15 = arith.constant 0 : i32
      %17 = vector.broadcast %c0_i32_15 : i32 to vector<16x1xi32>
      %18 = arith.cmpi eq, %13, %17 : vector<16x1xi32>
      %19 = vector.extract_strided_slice %15 {offsets = [0, 0], sizes = [1, 128], strides = [1, 1]} : vector<4x128xf32> to vector<1x128xf32>
      %20 = vector.shape_cast %19 : vector<1x128xf32> to vector<128xf32>
      %21 = vector.shape_cast %20 : vector<128xf32> to vector<1x128xf32>
      %22 = vector.shape_cast %18 : vector<16x1xi1> to vector<16x1xi1>
      %23 = vector.broadcast %22 : vector<16x1xi1> to vector<16x128xi1>
      %24 = vector.shape_cast %21 : vector<1x128xf32> to vector<1x128xf32>
      %25 = vector.broadcast %24 : vector<1x128xf32> to vector<16x128xf32>
      %26 = arith.select %23, %25, %16 : vector<16x128xi1>, vector<16x128xf32>
      %c1_i32 = arith.constant 1 : i32
      %27 = vector.broadcast %c1_i32 : i32 to vector<16x1xi32>
      %28 = arith.cmpi eq, %13, %27 : vector<16x1xi32>
      %29 = vector.extract_strided_slice %15 {offsets = [1, 0], sizes = [1, 128], strides = [1, 1]} : vector<4x128xf32> to vector<1x128xf32>
      %30 = vector.shape_cast %29 : vector<1x128xf32> to vector<128xf32>
      %31 = vector.shape_cast %30 : vector<128xf32> to vector<1x128xf32>
      %32 = vector.shape_cast %28 : vector<16x1xi1> to vector<16x1xi1>
      %33 = vector.broadcast %32 : vector<16x1xi1> to vector<16x128xi1>
      %34 = vector.shape_cast %31 : vector<1x128xf32> to vector<1x128xf32>
      %35 = vector.broadcast %34 : vector<1x128xf32> to vector<16x128xf32>
      %36 = arith.select %33, %35, %26 : vector<16x128xi1>, vector<16x128xf32>
      %c2_i32 = arith.constant 2 : i32
      %37 = vector.broadcast %c2_i32 : i32 to vector<16x1xi32>
      %38 = arith.cmpi eq, %13, %37 : vector<16x1xi32>
      %39 = vector.extract_strided_slice %15 {offsets = [2, 0], sizes = [1, 128], strides = [1, 1]} : vector<4x128xf32> to vector<1x128xf32>
      %40 = vector.shape_cast %39 : vector<1x128xf32> to vector<128xf32>
      %41 = vector.shape_cast %40 : vector<128xf32> to vector<1x128xf32>
      %42 = vector.shape_cast %38 : vector<16x1xi1> to vector<16x1xi1>
      %43 = vector.broadcast %42 : vector<16x1xi1> to vector<16x128xi1>
      %44 = vector.shape_cast %41 : vector<1x128xf32> to vector<1x128xf32>
      %45 = vector.broadcast %44 : vector<1x128xf32> to vector<16x128xf32>
      %46 = arith.select %43, %45, %36 : vector<16x128xi1>, vector<16x128xf32>
      %c3_i32 = arith.constant 3 : i32
      %47 = vector.broadcast %c3_i32 : i32 to vector<16x1xi32>
      %48 = arith.cmpi eq, %13, %47 : vector<16x1xi32>
      %49 = vector.extract_strided_slice %15 {offsets = [3, 0], sizes = [1, 128], strides = [1, 1]} : vector<4x128xf32> to vector<1x128xf32>
      %50 = vector.shape_cast %49 : vector<1x128xf32> to vector<128xf32>
      %51 = vector.shape_cast %50 : vector<128xf32> to vector<1x128xf32>
      %52 = vector.shape_cast %48 : vector<16x1xi1> to vector<16x1xi1>
      %53 = vector.broadcast %52 : vector<16x1xi1> to vector<16x128xi1>
      %54 = vector.shape_cast %51 : vector<1x128xf32> to vector<1x128xf32>
      %55 = vector.broadcast %54 : vector<1x128xf32> to vector<16x128xf32>
      %56 = arith.select %53, %55, %46 : vector<16x128xi1>, vector<16x128xf32>
      %c0_16 = arith.constant 0 : index
      %c0_17 = arith.constant 0 : index
      %57 = vector.load %arg8[%c0_16, %c0_17] : memref<16x128xf32, #tpu.memory_space<vmem>>, vector<16x128xf32>
      %58 = arith.mulf %57, %56 : vector<16x128xf32>
      %59 = arith.truncf %58 : vector<16x128xf32> to vector<16x128xbf16>
      %c0_18 = arith.constant 0 : index
      %c0_19 = arith.constant 0 : index
      %60 = vector.load %arg7[%c0_18, %c0_19] : memref<16x128xbf16, #tpu.memory_space<vmem>>, vector<16x128xbf16>
      tpu.vector_store %arg7[%c0_18, %c0_19], %59 {strides = array<i32>} : memref<16x128xbf16, #tpu.memory_space<vmem>>, vector<16x128xbf16>,
    } else {
    }
    return
  }
  func.func @transform_0(%arg0: i32, %arg1: i32, %arg2: i32) -> (i32, i32) {
    %c0_i32 = arith.constant 0 : i32
    %c0_i32_0 = arith.constant 0 : i32
    return %arg1, %c0_i32 : i32, i32
  }
  func.func @transform_1(%arg0: i32, %arg1: i32, %arg2: i32) -> (i32, i32) {
    %c0_i32 = arith.constant 0 : i32
    return %arg1, %arg2 : i32, i32
  }
  func.func @transform_2(%arg0: i32, %arg1: i32, %arg2: i32) -> (i32, i32) {
    %c0_i32 = arith.constant 0 : i32
    return %arg2, %arg0 : i32, i32
  }
  func.func @transform_3(%arg0: i32, %arg1: i32, %arg2: i32) -> (i32, i32) {
    %c0_i32 = arith.constant 0 : i32
    %c0_i32_0 = arith.constant 0 : i32
    return %c0_i32, %arg0 : i32, i32
  }
  func.func @transform_4(%arg0: i32, %arg1: i32, %arg2: i32) -> (i32, i32) {
    %c0_i32 = arith.constant 0 : i32
    return %arg1, %arg0 : i32, i32
  }
}

</mosaic_0001>

<bundles_post_ra>
// kernel: routing_forward.1
= control target key start
LH: loop header
LB: loop body
LE: loop exit
PB: predicated region body
PF: predicated region fallthrough
CT: control target
= control target key end

     0   :  { %9 = vsyncpa [#allocation4], 0  ;;  %s1089_s0 = inlined_call_operand.vmem [shape: s32[16,1], index: 0, kind: input, shape index: {}]   ;;  %s1090_s1 = inlined_call_operand.vmem [shape: f32[16,32], index: 1, kind: input, shape index: {}]   ;;  %s1091_s2 = inlined_call_operand.hbm [shape: bf16[32,256], index: 2, kind: input, shape index: {}]   ;;  %s1092_s3 = inlined_call_operand.vmem [shape: bf16[4,256], index: 3, kind: input, shape index: {}]   ;;  %s1093_s4 = inlined_call_operand.hbm [shape: bf16[16,256], index: 4, kind: output, shape index: {}]  }
   0x1   :  { %11 = vsyncpa [#allocation4 + $0x1], 0 }
   0x2   :  { %12 = vsyncpa [#allocation5], 0 }
   0x3   :  { %14 = vsyncpa [#allocation5 + $0x1], 0  ;;  %s898_s15 = smov 0   ;;  %s900_s16 = smov 0  }
   0x4   :  { %s902_s17 = smov 0   ;;  %s904_s18 = smov 0  }
   0x5   :  { %s906_s19 = smov 0   ;;  %s908_s20 = smov 0  }
   0x6 LB: > { %s634_s21 = sadd.s32 4294967295, %s860_s20   ;;  %s635_s22 = sadd.s32 4294967294, %s860_s20   ;;  %s860_s20 = sphi %s908_s20, %s20_s20   ;;  %s856_s19 = sphi %s906_s19, %s1107_s19   ;;  %s852_s18 = sphi %s904_s18, %s1106_s18   ;;  %s848_s17 = sphi %s902_s17, %s1105_s17   ;;  %s844_s16 = sphi %s900_s16, %s1104_s16   ;;  %s840_s15 = sphi %s898_s15, %s1103_s15  }
   0x7   : > { %s39_s23 = sadd.s32 1, %s856_s19  ;;  %s102_s24 = sadd.s32 1, %s848_s17 }
   0x8   : > { %p41_p0 = scmp.ge.s32.totalorder %s39_s23, 2  ;;  %p109_p1 = scmp.ne.s32.totalorder %s848_s17, %s844_s16 }
   0x9   : > { %p110_p2 = scmp.eq.s32.totalorder %s860_s20, 0  ;;  %p115_p3 = scmp.ne.s32.totalorder %s844_s16, %s840_s15 }
   0xa   : > { %s1109_s23 = smov (%p41_p0, %s39_s23), 0  ;;  %p116_p5 = scmp.eq.s32.totalorder %s634_s21, 0 }
   0xb   : > { %p939_p4 = por %p110_p2, %p109_p1  ;;  %s98_s26 = ssub.s32 %s856_s19, %s1109_s23 }
   0xc   : > { %p167_p6 = scmp.eq.s32.totalorder %s634_s21, 1  ;;  %p100_p7 = scmp.eq.s32.totalorder %s98_s26, 0 }
   0xd   : > { %p945_p8 = por %p116_p5, %p115_p3  ;;  %p173_p10 = scmp.eq.s32.totalorder %s635_s22, 1 }
   0xe   : > { %p949_p9 = por %p167_p6, %p109_p1  ;;  %p685_p13 = scmp.lt.s32.totalorder %s860_s20, 2 }
   0xf   : > { %s954_s29 = scalar_select %p100_p7, %s848_s17, %s102_s24  }
  0x10   : > { %s1097_s28 = scalar_select %p949_p9, 1, 0 }
  0x11   : > { %p956_p11 = por %p173_p10, %p115_p3  ;;  %s214_s5 = sand.u32 1, %s848_s17  }
  0x12   : > { %s640_s6 = sshll.u32 %s214_s5, 4  ;;  %s641_s7 = sshll.u32 %s856_s19, 6 }
  0x13   : > { %s1098_s30 = scalar_select %p956_p11, 1, 0 }
  0x14   : > { %s967_s10 = scalar_lea.hbm %s1091_s2, %s641_s7  ;;  %s218_s11 = scalar_lea.vmem [#allocation3], %s640_s6 }
  0x15   : > { %s227_s12 = sshll.u32 %s218_s11, 4  ;;  %p973_p0 = pnand %p685_p13, %p939_p4  ;;  %s969_s12 = int_to_ptr.vmem [resolvable:$true] %s227_s12 }
  0x16   : > { %s977_s14 = scalar_lea.sflag [#allocation4], %s214_s5  ;;  %s748_s21 = scalar_lea.hbm %s967_s10, 256 }
  0x17   : > { %p749_p1 = scmp.ne.s32.totalorder %s967_s10, %s748_s21  ;;  %p750_p2 = pneg %p973_p0 }
  0x18   : > { %s753_s25 = scalar_lea.hbm %s1091_s2, 512  ;;  %p754_p4 = scmp.lt.u32.totalorder %s967_s10, %s1091_s2 }
  0x19   : > { %p751_p3 = pnand %p750_p2, %p749_p1  ;;  %p755_p6 = scmp.lt.u32.totalorder %s753_s25, %s748_s21 }
  0x1a   : > { %p757_p10 = scmp.lt.u32.totalorder %s748_s21, %s967_s10 }
  0x1b   : > { %p752_p5 = pneg %p751_p3  ;;  %p756_p7 = por %p755_p6, %p754_p4 }
  0x1d   : > { %p758_p13 = por %p757_p10, %p756_p7 }
  0x1f   : > { %p759_p12 = pnand %p758_p13, %p752_p5 }
  0x21   : > { %762 = shalt.err (!%p759_p12)
}
  0x22   : > { %s763_s5 = scalar_lea.vmem %s969_s12, 256  ;;  %s862_s7 = smov [#allocation3]  }
  0x23   : > { %p764_p1 = scmp.ne.s32.totalorder %s969_s12, %s763_s5  ;;  %s768_s8 = sshll.u32 %s862_s7, 4  ;;  %s769_s8 = int_to_ptr.vmem [resolvable:$false] %s768_s8 }
  0x24   : > { %s770_s9 = scalar_lea.vmem %s769_s8, 512  ;;  %p771_p9 = scmp.lt.s32.totalorder %s969_s12, %s769_s8 }
  0x25   : > { %p766_p3 = pnand %p764_p1, %p750_p2  ;;  %p772_p4 = scmp.lt.s32.totalorder %s770_s9, %s763_s5 }
  0x27   : > { %p767_p11 = pneg %p766_p3  ;;  %p773_p6 = por %p772_p4, %p771_p9 }
  0x29   : > { %p774_p7 = pnand %p773_p6, %p767_p11 }
  0x2b   : > { %777 = shalt.err (!%p774_p7)
}
  0x2c   : > { %s863_s11 = smov 128   ;;  %s864_s21 = smov 64  }
  0x2d   : > { %s865_s22 = smov 4   ;;  %p642_p12 = scmp.ge.s32.totalorder %s860_s20, 1 }
  0x2e   : > { %680 = dma.hbm_to_vmem [thread:$0]  (!%p973_p0), %s967_s10, 256, %s969_s12, %s977_s14, %s863_s11, %s864_s21, %s865_s22  }
  0x2f   : > { %p242_p2 = scmp.lt.s32.totalorder %s860_s20, 3 }
  0x31   : > { %p243_p5 = pnand %p642_p12, %p242_p2 }
  0x32   : > { %s1008_s24 = sand.u32 (!%p243_p5), 1, %s844_s16  }
  0x33   : > { %246 = sbr.rel (%p243_p5) target bundleno = 303 (0x12f), region = 36  ;;  %s643_s25 = sshll.u32 (!%p243_p5), %s1008_s24, 4 }
  0x34   : > { %s249_s26 = scalar_lea.sflag (!%p243_p5), [#allocation4], %s1008_s24  ;;  %s252_s6 = scalar_lea.vmem (!%p243_p5), [#allocation3], %s643_s25 }
  0x3a   : > { %831 = dma.done.wait (%p945_p8), %s249_s26, 256  }
  0x3b   : > { %833 = vsyncadd (%p945_p8), %s249_s26, 4294967040  ;;  %v866_v0 = vmov 0.0   ;;  %vm867_vm0 = vmmov 0   ;;  %v868_v1 = vmov 0   ;;  %v746_v2 = vld [vmem:[%s252_s6] sm:$0xff]   ;;  %v747_v3 = vld [vmem:[%s252_s6 + $0x8] sm:$0xff]   ;;  %v411_v17 = vlaneseq }
  0x3c   : > { %665 = vmatprep.subr.bf16.mxu0 %v866_v0  ;;  %669 = vmatprep.mubr.msk.bf16.mxu0 %vm867_vm0, %v866_v0  ;;  %v322_v4 = vld [vmem:[%s1090_s1] sm:$0xff]  ;;  %v323_v5 = vld [vmem:[%s1090_s1 + $0x8] sm:$0xff]  ;;  %vm343_vm5 = vcmask 261120   ;;  %p310_p8 = scmp.lt.s32.totalorder %s852_s18, 1  ;;  %s644_s26 = sshll.u32 %s1008_s24, 3 }
  0x3d   : > { %745 = vset.pattern.permute.xlu1 %v868_v1  ;;  %744 = vset.pattern.permute.xlu0 %v868_v1  ;;  %v395_v6 = vld [vmem:[%s1089_s0] sm:$0xff]  ;;  %v396_v7 = vld [vmem:[%s1089_s0 + $0x8] sm:$0xff]  ;;  %v324_v10 = vpack.c.bf16 %v323_v5, %v322_v4  ;;  %v412_v20 = vshrl.u32 %v411_v17, 7  ;;  %s293_s6 = scalar_lea.vmem [#allocation6], %s644_s26  ;;  %s652_s12 = sshll.u32 %s852_s18, 6 }
  0x3e   : > { %666 = vmatpush3.bf16.msra.mxu0 %v746_v2  ;;  %vm417_vm1 = vcmp.eq.s32.totalorder %v395_v6, 1  ;;  %vm399_vm2 = vcmp.eq.s32.totalorder %v395_v6, 0  ;;  %vm418_vm3 = vcmp.eq.s32.totalorder %v396_v7, 1  ;;  %vm400_vm4 = vcmp.eq.s32.totalorder %v396_v7, 0  ;;  %s311_s9 = scalar_select %p310_p8, %s852_s18, 1 }
  0x3f   : > { %667 = vmatprep.subr.bf16.mxu0 %v866_v0  ;;  %v419_v8 = vsel %vm417_vm1, 1, %v868_v1  ;;  %v401_v9 = vsel %vm399_vm2, 1, %v868_v1  ;;  %v420_v11 = vsel %vm418_vm3, 1, %v868_v1  ;;  %v402_v12 = vsel %vm400_vm4, 1, %v868_v1  ;;  %s501_s10 = sshll.u32 %s293_s6, 4  ;;  %s1040_s27 = scalar_lea.hbm %s1093_s4, %s652_s12  ;;  %s1035_s10 = int_to_ptr.vmem [resolvable:$true] %s501_s10 }
  0x40   : > { %422 = vperm.xlu1 %745, %v419_v8   ;;  %404 = vperm.xlu0 %744, %v401_v9   ;;  %vm436_vm6 = vcmp.eq.s32.totalorder %v396_v7, 2  ;;  %vm435_vm7 = vcmp.eq.s32.totalorder %v395_v6, 2  ;;  %vm454_vm8 = vcmp.eq.s32.totalorder %v396_v7, 3  ;;  %vm453_vm9 = vcmp.eq.s32.totalorder %v395_v6, 3  ;;  %s645_s11 = sshll.u32 %s311_s9, 1  ;;  %s486_s5 = scalar_lea.sflag [#allocation5], %s1008_s24 }
  0x41   : > { %v438_v13 = vsel %vm436_vm6, 1, %v868_v1  ;;  %v437_v14 = vsel %vm435_vm7, 1, %v868_v1  ;;  %v456_v15 = vsel %vm454_vm8, 1, %v868_v1  ;;  %v455_v16 = vsel %vm453_vm9, 1, %v868_v1  ;;  %s313_s25 = scalar_lea.vmem %s1092_s3, %s645_s11  ;;  %s778_s18 = scalar_lea.vmem %s1035_s10, 128 }
  0x42   : > { %668 = vmatpush3.bf16.msra.mxu0 %v747_v3  ;;  %v397_v21 = vld [vmem:[%s313_s25] sm:$0x3]  ;;  %v413_v25 = vsub.s32 0, %v412_v20  ;;  %v431_v26 = vsub.s32 1, %v412_v20  ;;  %v449_v30 = vsub.s32 2, %v412_v20  ;;  %v467_v34 = vsub.s32 3, %v412_v20  ;;  %p779_p9 = scmp.ne.s32.totalorder %s1035_s10, %s778_s18 }
  0x43   : > { %v398_v24 = vunpack.c.l.bf16 %v397_v21  ;;  %p1100_p11 = scmp.ne.s32.totalorder %s1097_s28, 0  ;;  %s869_s7 = smov [#allocation6]  }
  0x44   : > { %425 = vperm.xlu1 %745, %v420_v11   ;;  %407 = vperm.xlu0 %744, %v402_v12   ;;  %s782_s8 = sshll.u32 %s869_s7, 4  ;;  %s783_s8 = int_to_ptr.vmem [resolvable:$false] %s782_s8 }
  0x45   : > { %670 = vmatmul.mubr.msk.bf16.vlgmr.msra.gmra.mrb[0].mxu0 %vm343_vm5, %v324_v10  ;;  %v414_v27 = vrot.slane %v398_v24, %v413_v25  ;;  %v432_v31 = vrot.slane %v398_v24, %v431_v26  ;;  %v450_v35 = vrot.slane %v398_v24, %v449_v30  ;;  %v468_v40 = vrot.slane %v398_v24, %v467_v34  ;;  %p780_p0 = pnand %p779_p9, %p1100_p11  ;;  %s784_s9 = scalar_lea.vmem %s783_s8, 256 }
  0x46   : > { %p785_p13 = scmp.lt.s32.totalorder %s1035_s10, %s783_s8  ;;  %p786_p1 = scmp.lt.s32.totalorder %s784_s9, %s778_s18 }
  0x47   : > { %p781_p10 = pneg %p780_p0 }
  0x48   : > { %443 = vperm.xlu1 %745, %v438_v13   ;;  %440 = vperm.xlu0 %744, %v437_v14   ;;  %p787_p3 = por %p786_p1, %p785_p13 }
  0x4a   : > { %p788_p4 = pnand %p787_p3, %p781_p10 }
  0x4c   : > { %461 = vperm.xlu1 %745, %v456_v15   ;;  %458 = vperm.xlu0 %744, %v455_v16  }
  0xbf   : > { %v423_v18 = vpop.permute.xlu1 %422  ;;  %v405_v19 = vpop.permute.xlu0 %404 }
  0xc0   : > { %vm409_vm10 = vcmp.eq.s32.totalorder %v405_v19, 1  ;;  %vm427_vm12 = vcmp.eq.s32.totalorder %v423_v18, 1 }
  0xc1   : > { %v415_v32 = vsel %vm409_vm10, %v414_v27, 0.0 }
  0xc2   : > { %v433_v36 = vsel %vm427_vm12, %v432_v31, %v415_v32 }
  0xc3   : > { %v426_v22 = vpop.permute.xlu1 %425  ;;  %v408_v23 = vpop.permute.xlu0 %407 }
  0xc4   : > { %vm410_vm11 = vcmp.eq.s32.totalorder %v408_v23, 1  ;;  %vm428_vm13 = vcmp.eq.s32.totalorder %v426_v22, 1 }
  0xc5   : > { %v416_v33 = vsel %vm410_vm11, %v414_v27, 0.0 }
  0xc6   : > { %v434_v37 = vsel %vm428_vm13, %v432_v31, %v416_v33 }
  0xc7   : > { %v444_v28 = vpop.permute.xlu1 %443  ;;  %v441_v29 = vpop.permute.xlu0 %440 }
  0xc8   : > { %vm446_vm14 = vcmp.eq.s32.totalorder %v444_v28, 1  ;;  %vm445_vm15 = vcmp.eq.s32.totalorder %v441_v29, 1 }
  0xc9   : > { %v452_v41 = vsel %vm446_vm14, %v450_v35, %v434_v37  ;;  %v451_v42 = vsel %vm445_vm15, %v450_v35, %v433_v36 }
  0xcb   : > { %v462_v38 = vpop.permute.xlu1 %461  ;;  %v459_v39 = vpop.permute.xlu0 %458 }
  0xcc   : > { %vm464_vm0 = vcmp.eq.s32.totalorder %v462_v38, 1  ;;  %vm463_vm1 = vcmp.eq.s32.totalorder %v459_v39, 1 }
  0xcd   : > { %v469_v45 = vsel %vm463_vm1, %v468_v40, %v451_v42  ;;  %v470_v47 = vsel %vm464_vm0, %v468_v40, %v452_v41 }
 0x118   : > { %v381_v43 = vpop.f32.mrb[0].mxu0 }
 0x119   : > { %v671_v44 = vpop.f32.mrb[1].mxu0  ;;  %v473_v48 = vmul.f32 %v469_v45, %v381_v43 }
 0x11a   : > { %v384_v46 = vpop.f32.mrb[2].mxu0 }
 0x11b   : > { %v474_v49 = vmul.f32 %v470_v47, %v384_v46  ;;  %v672_v50 = vpop.f32.mrb[3].mxu0 }
 0x11d   : > { %v660_v51 = vpack.c.bf16 %v474_v49, %v473_v48 }
 0x11f   : > { %661 = vst [vmem:[%s293_s6] sm:$0xff] %v660_v51  }
 0x120   : > { %791 = shalt.err (!%p788_p4)
}
 0x121   : > { %s792_s11 = scalar_lea.hbm %s1040_s27, 128  ;;  %s796_s25 = scalar_lea.hbm %s1093_s4, 256 }
 0x122   : > { %p793_p6 = scmp.ne.s32.totalorder %s1040_s27, %s792_s11  ;;  %p797_p2 = scmp.lt.u32.totalorder %s1040_s27, %s1093_s4 }
 0x123   : > { %p798_p5 = scmp.lt.u32.totalorder %s796_s25, %s792_s11  ;;  %p800_p9 = scmp.lt.u32.totalorder %s792_s11, %s1040_s27 }
 0x124   : > { %p794_p7 = pnand %p793_p6, %p1100_p11 }
 0x125   : > { %p799_p8 = por %p798_p5, %p797_p2 }
 0x126   : > { %p795_p12 = pneg %p794_p7 }
 0x127   : > { %p801_p0 = por %p800_p9, %p799_p8 }
 0x129   : > { %p802_p10 = pnand %p801_p0, %p795_p12 }
 0x12b   : > { %805 = shalt.err (!%p802_p10)
}
 0x12c   : > { %s870_s12 = smov 64   ;;  %s871_s13 = smov 128  }
 0x12d   : > { %s872_s14 = smov 4  }
 0x12e   : > { %675 = dma.vmem_to_hbm [thread:$0]  (%p1100_p11), %s1035_s10, 128, %s1040_s27, %s486_s5, %s870_s12, %s871_s13, %s872_s14  }
 0x12f PF: > { %s516_s18 = sand.u32 1, %s840_s15   ;;  %p1101_p13 = scmp.ne.s32.totalorder %s1098_s30, 0 }
 0x130   : > { %p1102_p1 = scmp.ge.s32.totalorder %s860_s20, 2  ;;  %s517_s7 = scalar_lea.sflag [#allocation5], %s516_s18 }
 0x132   : > { %p682_p3 = pnand %p1102_p1, %p1101_p13 }
 0x134   : > { %835 = dma.done.wait (!%p682_p3), %s517_s7, 128  }
 0x135   : > { %837 = vsyncadd (!%p682_p3), %s517_s7, 4294967168  ;;  %s20_s20 = sadd.s32 1, %s860_s20   ;;  %s1103_s15 = smov %s844_s16 }
 0x136   : > { %p17_p4 = scmp.ge.s32.totalorder %s20_s20, 4   ;;  %s1104_s16 = smov %s848_s17 }
 0x137   : > { %s1105_s17 = smov %s954_s29  ;;  %s1106_s18 = smov %s856_s19 }
 0x138   : > { %s1107_s19 = smov %s1109_s23  ;;  %19 = sbr.rel (!%p17_p4) target bundleno = 6 (0x6), region = 98 }
 0x13f   :  { %522 = vsyncpa [#allocation4], 1 }
 0x140   :  { %524 = vsyncpa [#allocation4 + $0x1], 1 }
 0x141   :  { %525 = vsyncpa [#allocation5], 1 }
 0x142   :  { %527 = vsyncpa [#allocation5 + $0x1], 1 }

</bundles_post_ra>
